<compile_context>
chip_gen: v6e
topology: v6e:2x2x1
jax: 0.10.0
libtpu: 0.0.40
codegen_flags: <defaults>
</compile_context>

<pallas_src>
import jax
import jax.numpy as jnp
from jax.experimental import pallas as pl
from jax.experimental.pallas import tpu as pltpu

BN_EPS = 1e-5
LANE = 128

H1 = 10   # dense1 output width
H2 = 5    # dense2 output width


def _sigmoid_eup(x):
    # sigmoid(x) == 0.5 * tanh(0.5 * x) + 0.5  -> single EUP transcendental,
    # no f32 divide (which would run Newton iterations on the VALU).
    return 0.5 * jnp.tanh(0.5 * x) + 0.5


def _batchnorm_train_fused(h, gamma, beta):
    # Training-mode BatchNorm1d with:
    #   - single pass stats: sum(h) and sum(h*h), var = E[h^2] - mean^2
    #   - affine folded into one scale/shift -> h*scale + shift (2 VPU ops/elem)
    inv_b = 1.0 / h.shape[0]
    s = jnp.sum(h, axis=0, keepdims=True)
    ss = jnp.sum(h * h, axis=0, keepdims=True)
    mean = s * inv_b
    var = ss * inv_b - mean * mean
    scale = jax.lax.rsqrt(var + BN_EPS) * gamma
    shift = beta - mean * scale
    return h * scale + shift


def predictor_kernel(
    x_ref,
    w1_ref, g1_ref, be1_ref,
    w2_ref, g2_ref, be2_ref,
    w3_ref, b3_ref,
    o_ref,
):
    x = x_ref[...].astype(jnp.float32)

    # dense1 (bias dropped: cancelled by bn1 mean subtraction) -> bn1 -> sigmoid
    h = jnp.dot(x, w1_ref[...], preferred_element_type=jnp.float32)
    h = _sigmoid_eup(_batchnorm_train_fused(h, g1_ref[...], be1_ref[...]))

    # dense2 (bias dropped: cancelled by bn2 mean subtraction) -> bn2 -> sigmoid
    h = jnp.dot(h, w2_ref[...], preferred_element_type=jnp.float32)
    h = _sigmoid_eup(_batchnorm_train_fused(h, g2_ref[...], be2_ref[...]))

    # dense3 (bias kept; output is lane-padded to 128 for an unmasked store)
    out = jnp.dot(h, w3_ref[...], preferred_element_type=jnp.float32) + b3_ref[...]
    o_ref[...] = out.astype(o_ref.dtype)


def predictor_v1_forward(x, params):
    B, F = x.shape
    num_outputs = params["w3"].shape[1]

    # Pad dense3's output dim to a full 128-lane tile (zero columns) so the
    # kernel's output store is lane-dense; slice back afterwards.
    pad = (-num_outputs) % LANE
    n_out_p = num_outputs + pad
    w3p = jnp.pad(params["w3"], ((0, 0), (0, pad)))
    b3p = jnp.pad(params["b3"], ((0, 0), (0, pad)))

    operands = (
        x,
        params["w1"], params["g1"], params["be1"],
        params["w2"], params["g2"], params["be2"],
        w3p, b3p,
    )

    vmem = pl.BlockSpec(memory_space=pltpu.MemorySpace.VMEM)

    # Advisory cost estimate for XLA scheduling around the custom call.
    flops = int(
        2 * B * (F * H1 + H1 * H2 + H2 * n_out_p)   # matmuls
        + 12 * B * (H1 + H2)                        # BN stats/normalize + sigmoid affine
    )
    transcendentals = int(B * (H1 + H2))            # tanh per hidden element
    bytes_accessed = int(sum(int(o.size) for o in operands) * 4 + B * n_out_p * 4)

    out = pl.pallas_call(
        predictor_kernel,
        out_shape=jax.ShapeDtypeStruct((B, n_out_p), jnp.float32),
        in_specs=[vmem] * len(operands),
        out_specs=vmem,
        compiler_params=pltpu.CompilerParams(vmem_limit_bytes=4 * 1024 * 1024),
        cost_estimate=pl.CostEstimate(
            flops=flops,
            transcendentals=transcendentals,
            bytes_accessed=bytes_accessed,
        ),
    )(*operands)

    return out[:, :num_outputs]


def init_params(key, num_inputs, num_outputs):
    """Deterministic init mimicking PyTorch defaults (U(-1/sqrt(fan_in), ...)
    for Linear, ones/zeros for BatchNorm affine params).  b1/b2 are kept in the
    param dict only for the pure-JAX reference (they are cancelled by BN)."""
    def linear(key, fan_in, fan_out):
        kw, kb = jax.random.split(key)
        bound = 1.0 / jnp.sqrt(jnp.float32(fan_in))
        w = jax.random.uniform(kw, (fan_in, fan_out), jnp.float32, -bound, bound)
        b = jax.random.uniform(kb, (1, fan_out), jnp.float32, -bound, bound)
        return w, b

    k1, k2, k3 = jax.random.split(key, 3)
    w1, b1 = linear(k1, num_inputs, H1)
    w2, b2 = linear(k2, H1, H2)
    w3, b3 = linear(k3, H2, num_outputs)
    return {
        "w1": w1, "b1": b1,
        "g1": jnp.ones((1, H1), jnp.float32), "be1": jnp.zeros((1, H1), jnp.float32),
        "w2": w2, "b2": b2,
        "g2": jnp.ones((1, H2), jnp.float32), "be2": jnp.zeros((1, H2), jnp.float32),
        "w3": w3, "b3": b3,
    }


def reference_forward(x, p):
    """Pure-JAX reference using the ORIGINAL formulation (biases included,
    two-pass batch statistics, exp-based sigmoid) to validate the algebraic
    simplifications inside the kernel."""
    def bn(h, gamma, beta):
        mean = jnp.mean(h, axis=0, keepdims=True)
        var = jnp.mean((h - mean) ** 2, axis=0, keepdims=True)
        return (h - mean) / jnp.sqrt(var + BN_EPS) * gamma + beta

    def sig(h):
        return 1.0 / (1.0 + jnp.exp(-h))

    h = x @ p["w1"] + p["b1"]
    h = sig(bn(h, p["g1"], p["be1"]))
    h = h @ p["w2"] + p["b2"]
    h = sig(bn(h, p["g2"], p["be2"]))
    return h @ p["w3"] + p["b3"]


if __name__ == "__main__":
    B, NUM_INPUTS, NUM_OUTPUTS = 8, 16, 4

    key = jax.random.PRNGKey(0)
    kx, kp = jax.random.split(key)
    x = jax.random.normal(kx, (B, NUM_INPUTS), jnp.float32)
    params = init_params(kp, NUM_INPUTS, NUM_OUTPUTS)

    out = predictor_v1_forward(x, params)
    out = jax.block_until_ready(out)

    ref = reference_forward(x, params)
    assert out.shape == (B, NUM_OUTPUTS)
    assert jnp.allclose(out, ref, atol=2e-5, rtol=1e-4), "mismatch vs reference"

    print("KERNEL_OK")
</pallas_src>

<mosaic_0001>
module attributes {stable_mosaic.version = 11 : i64} {
  func.func @predictor_kernel(%arg0: memref<8x16xf32, #tpu.memory_space<vmem>>, %arg1: memref<16x10xf32, #tpu.memory_space<vmem>>, %arg2: memref<1x10xf32, #tpu.memory_space<vmem>>, %arg3: memref<1x10xf32, #tpu.memory_space<vmem>>, %arg4: memref<10x5xf32, #tpu.memory_space<vmem>>, %arg5: memref<1x5xf32, #tpu.memory_space<vmem>>, %arg6: memref<1x5xf32, #tpu.memory_space<vmem>>, %arg7: memref<5x128xf32, #tpu.memory_space<vmem>>, %arg8: memref<1x128xf32, #tpu.memory_space<vmem>>, %arg9: memref<8x128xf32, #tpu.memory_space<vmem>>) attributes {dimension_semantics = [], scalar_prefetch = 0 : i64, scratch_operands = 0 : i64, tpu.core_type = #tpu.core_type<tc>} {
    %c0 = arith.constant 0 : index
    %c0_0 = arith.constant 0 : index
    %0 = vector.load %arg0[%c0, %c0_0] : memref<8x16xf32, #tpu.memory_space<vmem>>, vector<8x16xf32>
    %c0_1 = arith.constant 0 : index
    %c0_2 = arith.constant 0 : index
    %1 = vector.load %arg1[%c0_1, %c0_2] : memref<16x10xf32, #tpu.memory_space<vmem>>, vector<16x10xf32>
    %cst = arith.constant dense<0.000000e+00> : vector<8x10xf32>
    %2 = tpu.matmul %0, %1, %cst {dimension_numbers = #tpu.dot_dimension_numbers<[1], [0], [0], [1], [0, 0, 1, 1], [], []>} : vector<8x16xf32>, vector<16x10xf32>, vector<8x10xf32> -> vector<8x10xf32>
    %c0_3 = arith.constant 0 : index
    %c0_4 = arith.constant 0 : index
    %3 = vector.load %arg2[%c0_3, %c0_4] : memref<1x10xf32, #tpu.memory_space<vmem>>, vector<1x10xf32>
    %c0_5 = arith.constant 0 : index
    %c0_6 = arith.constant 0 : index
    %4 = vector.load %arg3[%c0_5, %c0_6] : memref<1x10xf32, #tpu.memory_space<vmem>>, vector<1x10xf32>
    %cst_7 = arith.constant dense<0.000000e+00> : vector<10xf32>
    %5 = vector.multi_reduction <add>, %2, %cst_7 [0] : vector<8x10xf32> to vector<10xf32>
    %6 = vector.shape_cast %5 : vector<10xf32> to vector<1x10xf32>
    %7 = arith.mulf %2, %2 : vector<8x10xf32>
    %cst_8 = arith.constant dense<0.000000e+00> : vector<10xf32>
    %8 = vector.multi_reduction <add>, %7, %cst_8 [0] : vector<8x10xf32> to vector<10xf32>
    %9 = vector.shape_cast %8 : vector<10xf32> to vector<1x10xf32>
    %cst_9 = arith.constant 1.250000e-01 : f32
    %10 = vector.broadcast %cst_9 : f32 to vector<1x10xf32>
    %11 = arith.mulf %6, %10 : vector<1x10xf32>
    %cst_10 = arith.constant 1.250000e-01 : f32
    %12 = vector.broadcast %cst_10 : f32 to vector<1x10xf32>
    %13 = arith.mulf %9, %12 : vector<1x10xf32>
    %14 = arith.mulf %11, %11 : vector<1x10xf32>
    %15 = arith.subf %13, %14 : vector<1x10xf32>
    %cst_11 = arith.constant 9.99999974E-6 : f32
    %16 = vector.broadcast %cst_11 : f32 to vector<1x10xf32>
    %17 = arith.addf %15, %16 : vector<1x10xf32>
    %18 = math.rsqrt %17 : vector<1x10xf32>
    %19 = arith.mulf %18, %3 : vector<1x10xf32>
    %20 = arith.mulf %11, %19 : vector<1x10xf32>
    %21 = arith.subf %4, %20 : vector<1x10xf32>
    %22 = vector.broadcast %19 : vector<1x10xf32> to vector<8x10xf32>
    %23 = arith.mulf %2, %22 : vector<8x10xf32>
    %24 = vector.broadcast %21 : vector<1x10xf32> to vector<8x10xf32>
    %25 = arith.addf %23, %24 : vector<8x10xf32>
    %cst_12 = arith.constant 5.000000e-01 : f32
    %26 = vector.broadcast %cst_12 : f32 to vector<8x10xf32>
    %27 = arith.mulf %26, %25 : vector<8x10xf32>
    %28 = math.tanh %27 : vector<8x10xf32>
    %cst_13 = arith.constant 5.000000e-01 : f32
    %29 = vector.broadcast %cst_13 : f32 to vector<8x10xf32>
    %30 = arith.mulf %29, %28 : vector<8x10xf32>
    %cst_14 = arith.constant 5.000000e-01 : f32
    %31 = vector.broadcast %cst_14 : f32 to vector<8x10xf32>
    %32 = arith.addf %30, %31 : vector<8x10xf32>
    %c0_15 = arith.constant 0 : index
    %c0_16 = arith.constant 0 : index
    %33 = vector.load %arg4[%c0_15, %c0_16] : memref<10x5xf32, #tpu.memory_space<vmem>>, vector<10x5xf32>
    %cst_17 = arith.constant dense<0.000000e+00> : vector<8x5xf32>
    %34 = tpu.matmul %32, %33, %cst_17 {dimension_numbers = #tpu.dot_dimension_numbers<[1], [0], [0], [1], [0, 0, 1, 1], [], []>} : vector<8x10xf32>, vector<10x5xf32>, vector<8x5xf32> -> vector<8x5xf32>
    %c0_18 = arith.constant 0 : index
    %c0_19 = arith.constant 0 : index
    %35 = vector.load %arg5[%c0_18, %c0_19] : memref<1x5xf32, #tpu.memory_space<vmem>>, vector<1x5xf32>
    %c0_20 = arith.constant 0 : index
    %c0_21 = arith.constant 0 : index
    %36 = vector.load %arg6[%c0_20, %c0_21] : memref<1x5xf32, #tpu.memory_space<vmem>>, vector<1x5xf32>
    %cst_22 = arith.constant dense<0.000000e+00> : vector<5xf32>
    %37 = vector.multi_reduction <add>, %34, %cst_22 [0] : vector<8x5xf32> to vector<5xf32>
    %38 = vector.shape_cast %37 : vector<5xf32> to vector<1x5xf32>
    %39 = arith.mulf %34, %34 : vector<8x5xf32>
    %cst_23 = arith.constant dense<0.000000e+00> : vector<5xf32>
    %40 = vector.multi_reduction <add>, %39, %cst_23 [0] : vector<8x5xf32> to vector<5xf32>
    %41 = vector.shape_cast %40 : vector<5xf32> to vector<1x5xf32>
    %cst_24 = arith.constant 1.250000e-01 : f32
    %42 = vector.broadcast %cst_24 : f32 to vector<1x5xf32>
    %43 = arith.mulf %38, %42 : vector<1x5xf32>
    %cst_25 = arith.constant 1.250000e-01 : f32
    %44 = vector.broadcast %cst_25 : f32 to vector<1x5xf32>
    %45 = arith.mulf %41, %44 : vector<1x5xf32>
    %46 = arith.mulf %43, %43 : vector<1x5xf32>
    %47 = arith.subf %45, %46 : vector<1x5xf32>
    %cst_26 = arith.constant 9.99999974E-6 : f32
    %48 = vector.broadcast %cst_26 : f32 to vector<1x5xf32>
    %49 = arith.addf %47, %48 : vector<1x5xf32>
    %50 = math.rsqrt %49 : vector<1x5xf32>
    %51 = arith.mulf %50, %35 : vector<1x5xf32>
    %52 = arith.mulf %43, %51 : vector<1x5xf32>
    %53 = arith.subf %36, %52 : vector<1x5xf32>
    %54 = vector.broadcast %51 : vector<1x5xf32> to vector<8x5xf32>
    %55 = arith.mulf %34, %54 : vector<8x5xf32>
    %56 = vector.broadcast %53 : vector<1x5xf32> to vector<8x5xf32>
    %57 = arith.addf %55, %56 : vector<8x5xf32>
    %cst_27 = arith.constant 5.000000e-01 : f32
    %58 = vector.broadcast %cst_27 : f32 to vector<8x5xf32>
    %59 = arith.mulf %58, %57 : vector<8x5xf32>
    %60 = math.tanh %59 : vector<8x5xf32>
    %cst_28 = arith.constant 5.000000e-01 : f32
    %61 = vector.broadcast %cst_28 : f32 to vector<8x5xf32>
    %62 = arith.mulf %61, %60 : vector<8x5xf32>
    %cst_29 = arith.constant 5.000000e-01 : f32
    %63 = vector.broadcast %cst_29 : f32 to vector<8x5xf32>
    %64 = arith.addf %62, %63 : vector<8x5xf32>
    %c0_30 = arith.constant 0 : index
    %c0_31 = arith.constant 0 : index
    %65 = vector.load %arg7[%c0_30, %c0_31] : memref<5x128xf32, #tpu.memory_space<vmem>>, vector<5x128xf32>
    %cst_32 = arith.constant dense<0.000000e+00> : vector<8x128xf32>
    %66 = tpu.matmul %64, %65, %cst_32 {dimension_numbers = #tpu.dot_dimension_numbers<[1], [0], [0], [1], [0, 0, 1, 1], [], []>} : vector<8x5xf32>, vector<5x128xf32>, vector<8x128xf32> -> vector<8x128xf32>
    %c0_33 = arith.constant 0 : index
    %c0_34 = arith.constant 0 : index
    %67 = vector.load %arg8[%c0_33, %c0_34] : memref<1x128xf32, #tpu.memory_space<vmem>>, vector<1x128xf32>
    %68 = vector.broadcast %67 : vector<1x128xf32> to vector<8x128xf32>
    %69 = arith.addf %66, %68 : vector<8x128xf32>
    %c0_35 = arith.constant 0 : index
    %c0_36 = arith.constant 0 : index
    %70 = vector.load %arg9[%c0_35, %c0_36] : memref<8x128xf32, #tpu.memory_space<vmem>>, vector<8x128xf32>
    tpu.vector_store %arg9[%c0_35, %c0_36], %69 {strides = array<i32>} : memref<8x128xf32, #tpu.memory_space<vmem>>, vector<8x128xf32>,
    return
  }
}

</mosaic_0001>

<bundles_post_ra>
// kernel: tpu_custom_call.1
= control target key start
LH: loop header
LB: loop body
LE: loop exit
PB: predicated region body
PF: predicated region fallthrough
CT: control target
= control target key end

     0   :  { %14 = vsyncpa [#allocation3], 0  ;;  %s610_s0 = inlined_call_operand.vmem [shape: f32[8,16], index: 0, kind: input, shape index: {}]   ;;  %s611_s1 = inlined_call_operand.vmem [shape: f32[16,10], index: 1, kind: input, shape index: {}]   ;;  %s612_s2 = inlined_call_operand.vmem [shape: f32[1,10], index: 2, kind: input, shape index: {}]   ;;  %s613_s3 = inlined_call_operand.hbm [shape: f32[1,10], index: 3, kind: input, shape index: {}]   ;;  %s614_s4 = inlined_call_operand.vmem [shape: f32[10,5], index: 4, kind: input, shape index: {}]   ;;  %s615_s5 = inlined_call_operand.hbm [shape: f32[1,5], index: 5, kind: input, shape index: {}]   ;;  %s616_s6 = inlined_call_operand.vmem [shape: f32[1,5], index: 6, kind: input, shape index: {}]   ;;  %s617_s7 = inlined_call_operand.vmem [shape: f32[5,128], index: 7, kind: input, shape index: {}]   ;;  %s618_s8 = inlined_call_operand.vmem [shape: f32[1,128], index: 8, kind: input, shape index: {}]   ;;  %s619_s9 = inlined_call_operand.hbm [shape: f32[8,128], index: 9, kind: output, shape index: {}]  }
   0x1   :  { %15 = vsyncpa [#allocation6], 0 }
   0x2   :  { %16 = vsyncpa [#allocation4], 0  ;;  %s513_s30 = smov [#allocation2]   ;;  %s514_s11 = smov [#allocation5]  }
   0x3   :  { %s29_s10 = sshll.u32 %s513_s30, 4  ;;  %s41_s12 = sshll.u32 %s514_s11, 4  ;;  %s30_s10 = int_to_ptr.vmem [resolvable:$true] %s29_s10  ;;  %s42_s12 = int_to_ptr.vmem [resolvable:$true] %s41_s12 }
   0x4   :  { %s455_s13 = scalar_lea.vmem %s30_s10, 16  ;;  %s459_s14 = scalar_lea.vmem %s30_s10, 32 }
   0x5   :  { %p456_p0 = scmp.ne.s32.totalorder %s30_s10, %s455_s13  ;;  %p460_p1 = scmp.lt.s32.totalorder %s30_s10, %s30_s10 }
   0x6   :  { %p461_p2 = scmp.lt.s32.totalorder %s459_s14, %s455_s13 }
   0x8   :  { %p462_p3 = por %p461_p2, %p460_p1 }
   0xa   :  { %p463_p4 = pnand %p462_p3, %p456_p0 }
   0xc   :  { %466 = shalt.err (!%p463_p4)
}
   0xd   :  { %32 = dma.hbm_to_vmem [thread:$0]  %s613_s3, 16, %s30_s10, [#allocation3]  }
   0xe   :  { %s475_s17 = scalar_lea.vmem %s42_s12, 16  ;;  %s479_s18 = scalar_lea.vmem %s42_s12, 32 }
   0xf   :  { %p476_p5 = scmp.ne.s32.totalorder %s42_s12, %s475_s17  ;;  %p480_p6 = scmp.lt.s32.totalorder %s42_s12, %s42_s12 }
  0x10   :  { %p481_p7 = scmp.lt.s32.totalorder %s479_s18, %s475_s17 }
  0x12   :  { %p482_p8 = por %p481_p7, %p480_p6 }
  0x14   :  { %p483_p9 = pnand %p482_p8, %p476_p5 }
  0x16   :  { %486 = shalt.err (!%p483_p9)
}
  0x17   :  { %44 = dma.hbm_to_vmem [thread:$0]  %s615_s5, 16, %s42_s12, [#allocation6]  }
  0x18   :  { %507 = dma.done.wait [#allocation3], 16  }
  0x19   :  { %508 = vsyncadd [#allocation3], 4294967280 }
  0x1a   :  { %509 = dma.done.wait [#allocation6], 16  }
  0x1b   :  { %510 = vsyncadd [#allocation6], 4294967280  ;;  %v515_v0 = vmov 0.0   ;;  %vm516_vm0 = vmmov 0   ;;  %v59_v1 = vld [vmem:[%s611_s1 + $0x8] sm:$0xff]  ;;  %v58_v2 = vld [vmem:[%s611_s1] sm:$0xff]  ;;  %v161_v28 = vlaneseq }
  0x1c   :  { %415 = vmatprep.subr.mxu0 %v515_v0  ;;  %419 = vmatprep.mubr.msk.f32.mxu0 %vm516_vm0, %v515_v0  ;;  %v57_v3 = vld [vmem:[%s610_s0] sm:$0xff]  ;;  %vm60_vm1 = vcmask 130048   ;;  %v178_v4 = vld [vmem:[%s614_s4 + $0x8] sm:$0x3]  ;;  %vm182_vm2 = vcmask 1041408   ;;  %vm136_vm3 = vcmask 80896  }
  0x1d   :  { %422 = vmatprep.subr.mxu1 %v515_v0  ;;  %426 = vmatprep.mubr.msk.f32.mxu1 %vm516_vm0, %v515_v0  ;;  %v177_v5 = vld [vmem:[%s614_s4] sm:$0xff]  ;;  %v162_v29 = vshrl.u32 %v161_v28, 7  ;;  %vm310_vm4 = vcmask 1044480   ;;  %vm258_vm5 = vcmask 39936   ;;  %s517_s11 = smov [#allocation7]  }
  0x1e   :  { %416 = vmatpush3.msra.mxu0 %v59_v1  ;;  %423 = vmatpush3.msk.msra.mxu1 %vm182_vm2, %v178_v4  ;;  %v134_v30 = vld [vmem:[%s612_s2] sm:$0x1]  ;;  %v256_v4 = vld [vmem:[#allocation5] sm:$0x1]  ;;  %s391_s12 = sshll.u32 %s517_s11, 4  ;;  %s392_s12 = int_to_ptr.vmem [resolvable:$true] %s391_s12 }
  0x1f   :  { %417 = vmatprep.subr.mxu0 %v515_v0  ;;  %424 = vmatprep.subr.mxu1 %v515_v0  ;;  %v163_v31 = vsub.s32 0, %v162_v29  ;;  %v135_v34 = vld [vmem:[#allocation2] sm:$0x1]  ;;  %p492_p11 = scmp.lt.s32.totalorder %s392_s12, %s392_s12 }
  0x20   :  { %418 = vmatpush3.msra.mxu0 %v58_v2  ;;  %425 = vmatpush3.msra.mxu1 %v177_v5  ;;  %v299_v45 = vld [vmem:[%s617_s7] sm:$0x1f] }
  0x21   :  { %420 = vmatmul.mubr.msk.f32.vlgmr.msra.gmra.mxu0 %vm60_vm1, %v57_v3  ;;  %429 = vmatprep.subr.mxu0 %v515_v0 }
  0x22   :  { %431 = vmatprep.mubr.msk.f32.mxu0 %vm516_vm0, %v515_v0  ;;  %430 = vmatpush3.msk.msra.mxu0 %vm310_vm4, %v299_v45 }
  0xe1   :  { %v130_v6 = vpop.f32.mrf.mxu0 }
  0xe2   :  { %v137_v7 = vsel %vm136_vm3, %v130_v6, 0.0  ;;  %v144_v8 = vmul.f32 %v130_v6, %v130_v6 }
  0xe3   :  { %v138_v9 = vrot.slane %v137_v7, 4  ;;  %v421_v10 = vpop.f32.mrf.mxu0 }
  0xe4   :  { %v145_v11 = vsel %vm136_vm3, %v144_v8, 0.0 }
  0xe5   :  { %v139_v12 = vadd.f32 %v138_v9, %v137_v7  ;;  %v146_v13 = vrot.slane %v145_v11, 4  ;;  %v257_v7 = vld [vmem:[%s616_s6] sm:$0x1]  ;;  %s487_s6 = scalar_lea.vmem %s392_s12, 128 }
  0xe6   :  { %p488_p10 = scmp.ne.s32.totalorder %s392_s12, %s487_s6  ;;  %p493_p12 = scmp.lt.s32.totalorder %s487_s6, %s487_s6 }
  0xe7   :  { %v140_v14 = vrot.slane %v139_v12, 2  ;;  %v147_v15 = vadd.f32 %v146_v13, %v145_v11 }
  0xe8   :  { %p494_p13 = por %p493_p12, %p492_p11 }
  0xe9   :  { %v141_v16 = vadd.f32 %v140_v14, %v139_v12  ;;  %v148_v17 = vrot.slane %v147_v15, 2 }
  0xea   :  { %p495_p0 = pnand %p494_p13, %p488_p10 }
  0xeb   :  { %v142_v18 = vrot.slane %v141_v16, 1  ;;  %v149_v19 = vadd.f32 %v148_v17, %v147_v15 }
  0xed   :  { %v143_v20 = vadd.f32 %v142_v18, %v141_v16  ;;  %v150_v21 = vrot.slane %v149_v19, 1  ;;  %v404_v18 = vld [vmem:[%s618_s8] ss:$0 sm:$0xff] }
  0xef   :  { %v151_v22 = vadd.f32 %v150_v21, %v149_v19  ;;  %v152_v23 = vmul.f32 0.125, %v143_v20 }
  0xf1   :  { %v153_v24 = vmul.f32 0.125, %v151_v22  ;;  %v154_v25 = vmul.f32 %v152_v23, %v152_v23 }
  0xf3   :  { %v155_v26 = vsub.f32 %v153_v24, %v154_v25 }
  0xf5   :  { %v156_v27 = vadd.f32 1e-05, %v155_v26 }
  0xf7   :  { %439 = vrsqrt.f32 %v156_v27 }
 0x104   :  { %v440_v32 = vpop.eup %439 }
 0x105   :  { %v158_v33 = vmul.f32 %v440_v32, %v134_v30 }
 0x107   :  { %v159_v35 = vmul.f32 %v158_v33, %v152_v23  ;;  %v164_v36 = vrot.slane %v158_v33, %v163_v31 }
 0x109   :  { %v160_v37 = vsub.f32 %v135_v34, %v159_v35  ;;  %v165_v38 = vmul.f32 %v164_v36, %v130_v6 }
 0x10b   :  { %v170_v39 = vrot.slane %v160_v37, %v163_v31 }
 0x10d   :  { %v172_v40 = vadd.f32 %v170_v39, %v165_v38 }
 0x10f   :  { %v173_v41 = vmul.f32 0.5, %v172_v40 }
 0x111   :  { %441 = vtanh.f32 %v173_v41 }
 0x11e   :  { %v442_v42 = vpop.eup %441 }
 0x11f   :  { %v175_v43 = vmul.f32 0.5, %v442_v42 }
 0x121   :  { %v176_v44 = vadd.f32 0.5, %v175_v43 }
 0x123   :  { %427 = vmatmul.mubr.msk.f32.vlgmr.msra.gmra.mxu1 %vm136_vm3, %v176_v44 }
 0x1e3   :  { %v252_v46 = vpop.f32.mrf.mxu1 }
 0x1e4   :  { %v259_v47 = vsel %vm258_vm5, %v252_v46, 0.0  ;;  %v266_v48 = vmul.f32 %v252_v46, %v252_v46 }
 0x1e5   :  { %v260_v49 = vrot.slane %v259_v47, 4  ;;  %v428_v50 = vpop.f32.mrf.mxu1 }
 0x1e6   :  { %v267_v51 = vsel %vm258_vm5, %v266_v48, 0.0 }
 0x1e7   :  { %v261_v52 = vadd.f32 %v260_v49, %v259_v47  ;;  %v268_v53 = vrot.slane %v267_v51, 4 }
 0x1e9   :  { %v262_v54 = vrot.slane %v261_v52, 2  ;;  %v269_v55 = vadd.f32 %v268_v53, %v267_v51 }
 0x1eb   :  { %v263_v56 = vadd.f32 %v262_v54, %v261_v52  ;;  %v270_v57 = vrot.slane %v269_v55, 2 }
 0x1ed   :  { %v264_v58 = vrot.slane %v263_v56, 1  ;;  %v271_v59 = vadd.f32 %v270_v57, %v269_v55 }
 0x1ef   :  { %v265_v60 = vadd.f32 %v264_v58, %v263_v56  ;;  %v272_v61 = vrot.slane %v271_v59, 1 }
 0x1f1   :  { %v273_v62 = vadd.f32 %v272_v61, %v271_v59  ;;  %v274_v63 = vmul.f32 0.125, %v265_v60 }
 0x1f3   :  { %v275_v0 = vmul.f32 0.125, %v273_v62  ;;  %v276_v1 = vmul.f32 %v274_v63, %v274_v63 }
 0x1f5   :  { %v277_v2 = vsub.f32 %v275_v0, %v276_v1 }
 0x1f7   :  { %v278_v3 = vadd.f32 1e-05, %v277_v2 }
 0x1f9   :  { %443 = vrsqrt.f32 %v278_v3 }
 0x206   :  { %v444_v5 = vpop.eup %443 }
 0x207   :  { %v280_v6 = vmul.f32 %v444_v5, %v256_v4 }
 0x209   :  { %v281_v8 = vmul.f32 %v280_v6, %v274_v63  ;;  %v286_v9 = vrot.slane %v280_v6, %v163_v31 }
 0x20b   :  { %v282_v10 = vsub.f32 %v257_v7, %v281_v8  ;;  %v287_v11 = vmul.f32 %v286_v9, %v252_v46 }
 0x20d   :  { %v292_v12 = vrot.slane %v282_v10, %v163_v31 }
 0x20f   :  { %v294_v13 = vadd.f32 %v292_v12, %v287_v11 }
 0x211   :  { %v295_v14 = vmul.f32 0.5, %v294_v13 }
 0x213   :  { %445 = vtanh.f32 %v295_v14 }
 0x220   :  { %v446_v15 = vpop.eup %445 }
 0x221   :  { %v297_v16 = vmul.f32 0.5, %v446_v15 }
 0x223   :  { %v298_v17 = vadd.f32 0.5, %v297_v16 }
 0x225   :  { %432 = vmatmul.mubr.msk.f32.vlgmr.msra.gmra.mxu0 %vm258_vm5, %v298_v17 }
 0x2e5   :  { %v380_v19 = vpop.f32.mrf.mxu0 }
 0x2e6   :  { %v381_v20 = vadd.f32 %v404_v18, %v380_v19 }
 0x2e7   :  { %v433_v21 = vpop.f32.mrf.mxu0 }
 0x2e8   :  { %384 = vst [vmem:[#allocation7] sm:$0xff] %v381_v20 }
 0x2e9   :  { %498 = shalt.err (!%p495_p0)
}
 0x2ea   :  { %394 = dma.vmem_to_hbm [thread:$0]  %s392_s12, 128, %s619_s9, [#allocation4]  }
 0x2eb   :  { %511 = dma.done.wait [#allocation4], 128  }
 0x2ec   :  { %512 = vsyncadd [#allocation4], 4294967168 }
 0x2ed   :  { %398 = vsyncpa [#allocation3], 1 }
 0x2ee   :  { %399 = vsyncpa [#allocation6], 1 }
 0x2ef   :  { %400 = vsyncpa [#allocation4], 1 }

</bundles_post_ra>
